<compile_context>
chip_gen: v7x
topology: tpu7x:2x2x1
jax: 0.10.0
libtpu: 0.0.40
codegen_flags: <defaults>
</compile_context>

<pallas_src>
import functools

import jax
import jax.numpy as jnp
from jax import lax
from jax.experimental import pallas as pl
from jax.experimental.pallas import tpu as pltpu


def _attention_kernel(x_ref, wqkv_ref, wp_ref, bp_ref, out_ref, o_sc,
                      *, num_heads, seq_len, batch_tile, compute_dtype):
    """One grid step = `batch_tile` batch elements (rows stacked along M)."""
    x = x_ref[...]            # (M, C) = (Bt*N, C), compute_dtype
    wqkv = wqkv_ref[...]      # (C, 3C)  scale already folded into the Q columns
    wp = wp_ref[...]          # (C, C)
    bp = bp_ref[...]          # (1, C)   f32

    M, C = x.shape
    N = seq_len
    H = num_heads
    hd = C // H

    # Full lane-width fused QKV for all heads and all Bt batch rows; f32 accumulate.
    qkv = jnp.dot(x, wqkv, preferred_element_type=jnp.float32)        # (M, 3C) f32

    # Cast once (full width) to the MXU compute dtype for the attention matmuls;
    # softmax math below stays f32.
    qkv_c = qkv if compute_dtype == jnp.float32 else qkv.astype(compute_dtype)
    q_all = qkv_c[:, :C]                                              # (M, C)
    k_all = qkv_c[:, C:2 * C]                                         # (M, C)
    v_all = qkv_c[:, 2 * C:]                                          # (M, C)

    # Head groups whose combined width is a multiple of 128 lanes (aligned stores).
    if hd < 128 and 128 % hd == 0:
        group = 128 // hd
    else:
        group = 1

    for b in range(batch_tile):            # static, small -> unrolled
        r0 = b * N
        for g0 in range(0, H, group):
            outs = []
            for h in range(g0, min(g0 + group, H)):
                q = q_all[r0:r0 + N, h * hd:(h + 1) * hd]             # (N, hd)
                k = k_all[r0:r0 + N, h * hd:(h + 1) * hd]             # (N, hd)
                v = v_all[r0:r0 + N, h * hd:(h + 1) * hd]             # (N, hd)

                # q @ k^T: minor-dim contraction on both sides -> MXU native
                # transposed-RHS path; f32 accumulation.
                s = lax.dot_general(q, k, (((1,), (1,)), ((), ())),
                                    preferred_element_type=jnp.float32)  # (N, N) f32

                # Numerically stable softmax (f32); divide replaced by a
                # post-PV rescale with an EUP reciprocal.
                s = s - jnp.max(s, axis=-1, keepdims=True)
                p = jnp.exp(s)
                l = jnp.sum(p, axis=-1, keepdims=True)                # (N, 1) f32
                o = jnp.dot(p.astype(compute_dtype), v,
                            preferred_element_type=jnp.float32)       # (N, hd) f32
                outs.append(o * pl.reciprocal(l, approx=True))

            blk = outs[0] if len(outs) == 1 else jnp.concatenate(outs, axis=-1)
            c0 = g0 * hd
            # 128-lane-aligned column window of the (M, C) scratch (torch's
            # .transpose(1, 2).reshape(B, N, C) column order).
            o_sc[r0:r0 + N, c0:c0 + blk.shape[-1]] = blk.astype(o_sc.dtype)

    # Full lane-width output projection + bias; lane-dense output store.
    y = jnp.dot(o_sc[...], wp, preferred_element_type=jnp.float32) + bp
    out_ref[...] = y.astype(out_ref.dtype)


def _fused_qkv_weight(w_qkv, scale):
    """torch qkv.weight (3C, C) -> (C, 3C) so that y = x @ W, with `scale`
    pre-folded into the Q columns.  Column order matches torch's
    .reshape(B, N, 3, H, hd): [q | k | v], each (H, hd)."""
    wt = jnp.transpose(w_qkv)                 # (C, 3C)
    C = wt.shape[0]
    return jnp.concatenate([wt[:, :C] * scale, wt[:, C:]], axis=1)


def _pick_batch_tile(B, N, target_rows=512):
    """Largest divisor Bt of B with Bt*N <= target_rows, preferring >= 2 grid
    steps so megacore / v7x's 2 TensorCores both get work."""
    divisors = [d for d in range(1, B + 1) if B % d == 0]
    feasible = [d for d in divisors if d * N <= target_rows] or [1]
    multi = [d for d in feasible if B // d >= 2]
    return max(multi) if multi else max(feasible)


def attention_pallas(x, w_qkv, w_proj, b_proj, num_heads,
                     mxu_dtype=jnp.bfloat16, batch_tile=None, target_rows=512):
    """x: (B, N, C).
       w_qkv : (3C, C)  -- torch nn.Linear(dim, 3*dim, bias=False).weight
       w_proj: (C, C)   -- torch nn.Linear(dim, dim).weight
       b_proj: (C,)     -- torch nn.Linear(dim, dim).bias
       mxu_dtype: MXU operand dtype (bf16 default; the MXU is bf16-native on
       v5e/v6e/v7x).  Accumulation and softmax stay f32.  None -> all-f32 path.
    """
    B, N, C = x.shape
    H = num_heads
    assert C % H == 0
    hd = C // H
    scale = float(hd) ** -0.5
    out_dtype = x.dtype

    # ---- plain-JAX glue: fused, pre-transposed, pre-scaled weight slabs ----
    wqkv = _fused_qkv_weight(w_qkv, scale)    # (C, 3C)
    wp = jnp.transpose(w_proj)                # (C, C): y = o @ wp
    bp = b_proj.reshape(1, C).astype(jnp.float32)

    compute_dtype = jnp.float32 if mxu_dtype is None else mxu_dtype
    if mxu_dtype is not None:
        x_in = x.astype(mxu_dtype)
        wqkv = wqkv.astype(mxu_dtype)
        wp = wp.astype(mxu_dtype)
    else:
        x_in = x

    if batch_tile is None:
        batch_tile = _pick_batch_tile(B, N, target_rows)
    assert B % batch_tile == 0
    Bt = batch_tile
    M = Bt * N                                # MXU M-dim per grid step
    grid = (B // Bt,)

    # Lane-dense 2-D view: batch elements stacked along the sublane (row) axis.
    # TODO(synk): for N=197 pad N to a multiple of 8 (or 256) with -inf key masking.
    x2d = x_in.reshape(B * N, C)

    kernel = functools.partial(_attention_kernel, num_heads=H, seq_len=N,
                               batch_tile=Bt, compute_dtype=compute_dtype)

    # ---- explicit VMEM budget (keeps the same tiling viable on v7x's 64 MiB) ----
    w_item = jnp.dtype(wqkv.dtype).itemsize
    c_item = jnp.dtype(compute_dtype).itemsize
    w_bytes = (C * 3 * C + C * C) * w_item + C * 4            # single-buffered weights + bias
    io_bytes = 2 * M * C * jnp.dtype(x_in.dtype).itemsize \
             + 2 * M * C * jnp.dtype(out_dtype).itemsize      # double-buffered x / out blocks
    inter_bytes = (M * 3 * C * 4                              # f32 qkv accumulator
                   + M * 3 * C * c_item                       # compute-dtype copy
                   + M * C * c_item                           # o_sc scratch
                   + 3 * N * N * 4)                           # score / exp working set
    vmem_limit = int(min(max(w_bytes + io_bytes + inter_bytes + (4 << 20), 16 << 20),
                         56 << 20))

    # Advisory cost estimate so XLA schedules around the custom call sensibly.
    flops = (2 * B * N * C * (3 * C)          # QKV
             + 4 * B * H * N * N * hd         # scores + PV
             + 2 * B * N * C * C)             # projection
    transcendentals = B * H * N * N + B * H * N
    bytes_accessed = int(x2d.size * jnp.dtype(x2d.dtype).itemsize
                         + wqkv.size * w_item + wp.size * w_item + bp.size * 4
                         + B * N * C * jnp.dtype(out_dtype).itemsize)

    resident = functools.partial(pl.BlockSpec, pipeline_mode=pl.Buffered(1))

    out2d = pl.pallas_call(
        kernel,
        out_shape=jax.ShapeDtypeStruct((B * N, C), out_dtype),
        grid_spec=pltpu.PrefetchScalarGridSpec(
            num_scalar_prefetch=0,
            grid=grid,
            in_specs=[
                pl.BlockSpec((M, C), lambda i: (i, 0)),            # x rows (per Bt batches)
                resident((C, 3 * C), lambda i: (0, 0)),            # fused QKV weight (resident, 1-buffered)
                resident((C, C), lambda i: (0, 0)),                # proj weight (resident, 1-buffered)
                resident((1, C), lambda i: (0, 0)),                # proj bias (resident, 1-buffered)
            ],
            out_specs=pl.BlockSpec((M, C), lambda i: (i, 0)),
            scratch_shapes=[pltpu.VMEM((M, C), compute_dtype)],    # head-group assembly scratch
        ),
        compiler_params=pltpu.CompilerParams(
            dimension_semantics=("parallel",),
            vmem_limit_bytes=vmem_limit),
        cost_estimate=pl.CostEstimate(flops=flops,
                                      transcendentals=transcendentals,
                                      bytes_accessed=bytes_accessed),
    )(x2d, wqkv, wp, bp)

    return out2d.reshape(B, N, C)


def attention_reference(x, w_qkv, w_proj, b_proj, num_heads):
    """Pure-JAX replica of the PyTorch forward pass for verification."""
    B, N, C = x.shape
    hd = C // num_heads
    qkv = x @ w_qkv.T                                           # (B, N, 3C)
    qkv = qkv.reshape(B, N, 3, num_heads, hd).transpose(2, 0, 3, 1, 4)
    q, k, v = qkv[0], qkv[1], qkv[2]                            # (B, H, N, hd)
    attn = (q @ jnp.swapaxes(k, -2, -1)) * (hd ** -0.5)         # (B, H, N, N)
    attn = jax.nn.softmax(attn, axis=-1)
    o = (attn @ v).transpose(0, 2, 1, 3).reshape(B, N, C)       # (B, N, C)
    return o @ w_proj.T + b_proj


if __name__ == "__main__":
    # Small but lane-dense shapes: batch=2, tokens=16, dim=128, heads=4 (hd=32).
    B, N, C, H = 2, 16, 128, 4

    key = jax.random.PRNGKey(0)
    kx, kqkv, kp, kb = jax.random.split(key, 4)

    x = jax.random.normal(kx, (B, N, C), dtype=jnp.float32)
    # Deterministic synthetic parameters (torch Linear weight shapes).
    w_qkv = 0.1 * jax.random.normal(kqkv, (3 * C, C), dtype=jnp.float32)
    w_proj = 0.1 * jax.random.normal(kp, (C, C), dtype=jnp.float32)
    b_proj = 0.1 * jax.random.normal(kb, (C,), dtype=jnp.float32)

    ref = attention_reference(x, w_qkv, w_proj, b_proj, H)

    # All-f32 path (tolerance covers the approx EUP reciprocal).
    out_f32 = attention_pallas(x, w_qkv, w_proj, b_proj, H, mxu_dtype=None)
    out_f32 = jax.block_until_ready(out_f32)
    assert out_f32.shape == (B, N, C)
    assert jnp.allclose(out_f32, ref, rtol=5e-3, atol=5e-3), "f32 mismatch vs reference"

    # Default bf16 MXU-operand path (all generations), f32 accumulation/softmax.
    out_bf16 = attention_pallas(x, w_qkv, w_proj, b_proj, H)
    out_bf16 = jax.block_until_ready(out_bf16)
    assert out_bf16.shape == (B, N, C)
    assert jnp.allclose(out_bf16, ref, rtol=1e-1, atol=1e-1), "bf16 mismatch vs reference"

    print("KERNEL_OK")
</pallas_src>

<mosaic_0001>
module attributes {stable_mosaic.version = 11 : i64} {
  func.func @_attention_kernel(%arg0: i32, %arg1: memref<16x128xf32, #tpu.memory_space<vmem>>, %arg2: memref<128x384xf32, #tpu.memory_space<vmem>>, %arg3: memref<128x128xf32, #tpu.memory_space<vmem>>, %arg4: memref<1x128xf32, #tpu.memory_space<vmem>>, %arg5: memref<16x128xf32, #tpu.memory_space<vmem>>, %arg6: memref<16x128xf32, #tpu.memory_space<vmem>>) attributes {dimension_semantics = [#tpu.dimension_semantics<parallel>], iteration_bounds = array<i64: 2>, scalar_prefetch = 0 : i64, scratch_operands = 1 : i64, tpu.core_type = #tpu.core_type<tc>, window_params = [{transform_indices = @transform_0, window_bounds = array<i64: 16, 128>}, {pipeline_mode = #tpu.pipeline_mode<synchronous>, transform_indices = @transform_1, window_bounds = array<i64: 128, 384>}, {pipeline_mode = #tpu.pipeline_mode<synchronous>, transform_indices = @transform_2, window_bounds = array<i64: 128, 128>}, {pipeline_mode = #tpu.pipeline_mode<synchronous>, transform_indices = @transform_3, window_bounds = array<i64: 1, 128>}, {transform_indices = @transform_4, window_bounds = array<i64: 16, 128>}]} {
    %c0 = arith.constant 0 : index
    %c0_0 = arith.constant 0 : index
    %0 = vector.load %arg1[%c0, %c0_0] : memref<16x128xf32, #tpu.memory_space<vmem>>, vector<16x128xf32>
    %c0_1 = arith.constant 0 : index
    %c0_2 = arith.constant 0 : index
    %1 = vector.load %arg2[%c0_1, %c0_2] : memref<128x384xf32, #tpu.memory_space<vmem>>, vector<128x384xf32>
    %c0_3 = arith.constant 0 : index
    %c0_4 = arith.constant 0 : index
    %2 = vector.load %arg3[%c0_3, %c0_4] : memref<128x128xf32, #tpu.memory_space<vmem>>, vector<128x128xf32>
    %c0_5 = arith.constant 0 : index
    %c0_6 = arith.constant 0 : index
    %3 = vector.load %arg4[%c0_5, %c0_6] : memref<1x128xf32, #tpu.memory_space<vmem>>, vector<1x128xf32>
    %cst = arith.constant dense<0.000000e+00> : vector<16x384xf32>
    %4 = tpu.matmul %0, %1, %cst {dimension_numbers = #tpu.dot_dimension_numbers<[1], [0], [0], [1], [0, 0, 1, 1], [], []>} : vector<16x128xf32>, vector<128x384xf32>, vector<16x384xf32> -> vector<16x384xf32>
    %5 = vector.extract_strided_slice %4 {offsets = [0, 0], sizes = [16, 128], strides = [1, 1]} : vector<16x384xf32> to vector<16x128xf32>
    %6 = vector.extract_strided_slice %4 {offsets = [0, 128], sizes = [16, 128], strides = [1, 1]} : vector<16x384xf32> to vector<16x128xf32>
    %7 = vector.extract_strided_slice %4 {offsets = [0, 256], sizes = [16, 128], strides = [1, 1]} : vector<16x384xf32> to vector<16x128xf32>
    %8 = vector.extract_strided_slice %5 {offsets = [0, 0], sizes = [16, 32], strides = [1, 1]} : vector<16x128xf32> to vector<16x32xf32>
    %9 = vector.extract_strided_slice %6 {offsets = [0, 0], sizes = [16, 32], strides = [1, 1]} : vector<16x128xf32> to vector<16x32xf32>
    %10 = vector.extract_strided_slice %7 {offsets = [0, 0], sizes = [16, 32], strides = [1, 1]} : vector<16x128xf32> to vector<16x32xf32>
    %cst_7 = arith.constant dense<0.000000e+00> : vector<16x16xf32>
    %11 = tpu.matmul %8, %9, %cst_7 {dimension_numbers = #tpu.dot_dimension_numbers<[1], [1], [0], [0], [0, 0, 1, 0], [], []>} : vector<16x32xf32>, vector<16x32xf32>, vector<16x16xf32> -> vector<16x16xf32>
    %cst_8 = arith.constant dense<0xFF800000> : vector<16xf32>
    %12 = vector.multi_reduction <maximumf>, %11, %cst_8 [1] : vector<16x16xf32> to vector<16xf32>
    %13 = vector.shape_cast %12 : vector<16xf32> to vector<16x1xf32>
    %14 = vector.broadcast %13 : vector<16x1xf32> to vector<16x16xf32>
    %15 = arith.subf %11, %14 : vector<16x16xf32>
    %16 = math.exp %15 : vector<16x16xf32>
    %cst_9 = arith.constant dense<0.000000e+00> : vector<16xf32>
    %17 = vector.multi_reduction <add>, %16, %cst_9 [1] : vector<16x16xf32> to vector<16xf32>
    %18 = vector.shape_cast %17 : vector<16xf32> to vector<16x1xf32>
    %cst_10 = arith.constant dense<0.000000e+00> : vector<16x32xf32>
    %19 = tpu.matmul %16, %10, %cst_10 {dimension_numbers = #tpu.dot_dimension_numbers<[1], [0], [0], [1], [0, 0, 1, 1], [], []>} : vector<16x16xf32>, vector<16x32xf32>, vector<16x32xf32> -> vector<16x32xf32>
    %20 = tpu.reciprocal %18 {approx = true} : vector<16x1xf32> -> vector<16x1xf32>
    %21 = vector.broadcast %20 : vector<16x1xf32> to vector<16x32xf32>
    %22 = arith.mulf %19, %21 : vector<16x32xf32>
    %23 = vector.extract_strided_slice %5 {offsets = [0, 32], sizes = [16, 32], strides = [1, 1]} : vector<16x128xf32> to vector<16x32xf32>
    %24 = vector.extract_strided_slice %6 {offsets = [0, 32], sizes = [16, 32], strides = [1, 1]} : vector<16x128xf32> to vector<16x32xf32>
    %25 = vector.extract_strided_slice %7 {offsets = [0, 32], sizes = [16, 32], strides = [1, 1]} : vector<16x128xf32> to vector<16x32xf32>
    %cst_11 = arith.constant dense<0.000000e+00> : vector<16x16xf32>
    %26 = tpu.matmul %23, %24, %cst_11 {dimension_numbers = #tpu.dot_dimension_numbers<[1], [1], [0], [0], [0, 0, 1, 0], [], []>} : vector<16x32xf32>, vector<16x32xf32>, vector<16x16xf32> -> vector<16x16xf32>
    %cst_12 = arith.constant dense<0xFF800000> : vector<16xf32>
    %27 = vector.multi_reduction <maximumf>, %26, %cst_12 [1] : vector<16x16xf32> to vector<16xf32>
    %28 = vector.shape_cast %27 : vector<16xf32> to vector<16x1xf32>
    %29 = vector.broadcast %28 : vector<16x1xf32> to vector<16x16xf32>
    %30 = arith.subf %26, %29 : vector<16x16xf32>
    %31 = math.exp %30 : vector<16x16xf32>
    %cst_13 = arith.constant dense<0.000000e+00> : vector<16xf32>
    %32 = vector.multi_reduction <add>, %31, %cst_13 [1] : vector<16x16xf32> to vector<16xf32>
    %33 = vector.shape_cast %32 : vector<16xf32> to vector<16x1xf32>
    %cst_14 = arith.constant dense<0.000000e+00> : vector<16x32xf32>
    %34 = tpu.matmul %31, %25, %cst_14 {dimension_numbers = #tpu.dot_dimension_numbers<[1], [0], [0], [1], [0, 0, 1, 1], [], []>} : vector<16x16xf32>, vector<16x32xf32>, vector<16x32xf32> -> vector<16x32xf32>
    %35 = tpu.reciprocal %33 {approx = true} : vector<16x1xf32> -> vector<16x1xf32>
    %36 = vector.broadcast %35 : vector<16x1xf32> to vector<16x32xf32>
    %37 = arith.mulf %34, %36 : vector<16x32xf32>
    %38 = vector.extract_strided_slice %5 {offsets = [0, 64], sizes = [16, 32], strides = [1, 1]} : vector<16x128xf32> to vector<16x32xf32>
    %39 = vector.extract_strided_slice %6 {offsets = [0, 64], sizes = [16, 32], strides = [1, 1]} : vector<16x128xf32> to vector<16x32xf32>
    %40 = vector.extract_strided_slice %7 {offsets = [0, 64], sizes = [16, 32], strides = [1, 1]} : vector<16x128xf32> to vector<16x32xf32>
    %cst_15 = arith.constant dense<0.000000e+00> : vector<16x16xf32>
    %41 = tpu.matmul %38, %39, %cst_15 {dimension_numbers = #tpu.dot_dimension_numbers<[1], [1], [0], [0], [0, 0, 1, 0], [], []>} : vector<16x32xf32>, vector<16x32xf32>, vector<16x16xf32> -> vector<16x16xf32>
    %cst_16 = arith.constant dense<0xFF800000> : vector<16xf32>
    %42 = vector.multi_reduction <maximumf>, %41, %cst_16 [1] : vector<16x16xf32> to vector<16xf32>
    %43 = vector.shape_cast %42 : vector<16xf32> to vector<16x1xf32>
    %44 = vector.broadcast %43 : vector<16x1xf32> to vector<16x16xf32>
    %45 = arith.subf %41, %44 : vector<16x16xf32>
    %46 = math.exp %45 : vector<16x16xf32>
    %cst_17 = arith.constant dense<0.000000e+00> : vector<16xf32>
    %47 = vector.multi_reduction <add>, %46, %cst_17 [1] : vector<16x16xf32> to vector<16xf32>
    %48 = vector.shape_cast %47 : vector<16xf32> to vector<16x1xf32>
    %cst_18 = arith.constant dense<0.000000e+00> : vector<16x32xf32>
    %49 = tpu.matmul %46, %40, %cst_18 {dimension_numbers = #tpu.dot_dimension_numbers<[1], [0], [0], [1], [0, 0, 1, 1], [], []>} : vector<16x16xf32>, vector<16x32xf32>, vector<16x32xf32> -> vector<16x32xf32>
    %50 = tpu.reciprocal %48 {approx = true} : vector<16x1xf32> -> vector<16x1xf32>
    %51 = vector.broadcast %50 : vector<16x1xf32> to vector<16x32xf32>
    %52 = arith.mulf %49, %51 : vector<16x32xf32>
    %53 = vector.extract_strided_slice %5 {offsets = [0, 96], sizes = [16, 32], strides = [1, 1]} : vector<16x128xf32> to vector<16x32xf32>
    %54 = vector.extract_strided_slice %6 {offsets = [0, 96], sizes = [16, 32], strides = [1, 1]} : vector<16x128xf32> to vector<16x32xf32>
    %55 = vector.extract_strided_slice %7 {offsets = [0, 96], sizes = [16, 32], strides = [1, 1]} : vector<16x128xf32> to vector<16x32xf32>
    %cst_19 = arith.constant dense<0.000000e+00> : vector<16x16xf32>
    %56 = tpu.matmul %53, %54, %cst_19 {dimension_numbers = #tpu.dot_dimension_numbers<[1], [1], [0], [0], [0, 0, 1, 0], [], []>} : vector<16x32xf32>, vector<16x32xf32>, vector<16x16xf32> -> vector<16x16xf32>
    %cst_20 = arith.constant dense<0xFF800000> : vector<16xf32>
    %57 = vector.multi_reduction <maximumf>, %56, %cst_20 [1] : vector<16x16xf32> to vector<16xf32>
    %58 = vector.shape_cast %57 : vector<16xf32> to vector<16x1xf32>
    %59 = vector.broadcast %58 : vector<16x1xf32> to vector<16x16xf32>
    %60 = arith.subf %56, %59 : vector<16x16xf32>
    %61 = math.exp %60 : vector<16x16xf32>
    %cst_21 = arith.constant dense<0.000000e+00> : vector<16xf32>
    %62 = vector.multi_reduction <add>, %61, %cst_21 [1] : vector<16x16xf32> to vector<16xf32>
    %63 = vector.shape_cast %62 : vector<16xf32> to vector<16x1xf32>
    %cst_22 = arith.constant dense<0.000000e+00> : vector<16x32xf32>
    %64 = tpu.matmul %61, %55, %cst_22 {dimension_numbers = #tpu.dot_dimension_numbers<[1], [0], [0], [1], [0, 0, 1, 1], [], []>} : vector<16x16xf32>, vector<16x32xf32>, vector<16x32xf32> -> vector<16x32xf32>
    %65 = tpu.reciprocal %63 {approx = true} : vector<16x1xf32> -> vector<16x1xf32>
    %66 = vector.broadcast %65 : vector<16x1xf32> to vector<16x32xf32>
    %67 = arith.mulf %64, %66 : vector<16x32xf32>
    %68 = tpu.concatenate %22, %37, %52, %67 in 1 : vector<16x32xf32>, vector<16x32xf32>, vector<16x32xf32>, vector<16x32xf32> -> vector<16x128xf32>
    %c0_23 = arith.constant 0 : index
    %c0_24 = arith.constant 0 : index
    %69 = vector.load %arg6[%c0_23, %c0_24] : memref<16x128xf32, #tpu.memory_space<vmem>>, vector<16x128xf32>
    tpu.vector_store %arg6[%c0_23, %c0_24], %68 {strides = array<i32>} : memref<16x128xf32, #tpu.memory_space<vmem>>, vector<16x128xf32>,
    %c0_25 = arith.constant 0 : index
    %c0_26 = arith.constant 0 : index
    %70 = vector.load %arg6[%c0_25, %c0_26] : memref<16x128xf32, #tpu.memory_space<vmem>>, vector<16x128xf32>
    %cst_27 = arith.constant dense<0.000000e+00> : vector<16x128xf32>
    %71 = tpu.matmul %70, %2, %cst_27 {dimension_numbers = #tpu.dot_dimension_numbers<[1], [0], [0], [1], [0, 0, 1, 1], [], []>} : vector<16x128xf32>, vector<128x128xf32>, vector<16x128xf32> -> vector<16x128xf32>
    %72 = vector.broadcast %3 : vector<1x128xf32> to vector<16x128xf32>
    %73 = arith.addf %71, %72 : vector<16x128xf32>
    %c0_28 = arith.constant 0 : index
    %c0_29 = arith.constant 0 : index
    %74 = vector.load %arg5[%c0_28, %c0_29] : memref<16x128xf32, #tpu.memory_space<vmem>>, vector<16x128xf32>
    tpu.vector_store %arg5[%c0_28, %c0_29], %73 {strides = array<i32>} : memref<16x128xf32, #tpu.memory_space<vmem>>, vector<16x128xf32>,
    return
  }
  func.func @transform_0(%arg0: i32) -> (i32, i32) {
    %c0_i32 = arith.constant 0 : i32
    %c0_i32_0 = arith.constant 0 : i32
    return %arg0, %c0_i32 : i32, i32
  }
  func.func @transform_1(%arg0: i32) -> (i32, i32) {
    %c0_i32 = arith.constant 0 : i32
    %c0_i32_0 = arith.constant 0 : i32
    %c0_i32_1 = arith.constant 0 : i32
    return %c0_i32, %c0_i32_0 : i32, i32
  }
  func.func @transform_2(%arg0: i32) -> (i32, i32) {
    %c0_i32 = arith.constant 0 : i32
    %c0_i32_0 = arith.constant 0 : i32
    %c0_i32_1 = arith.constant 0 : i32
    return %c0_i32, %c0_i32_0 : i32, i32
  }
  func.func @transform_3(%arg0: i32) -> (i32, i32) {
    %c0_i32 = arith.constant 0 : i32
    %c0_i32_0 = arith.constant 0 : i32
    %c0_i32_1 = arith.constant 0 : i32
    return %c0_i32, %c0_i32_0 : i32, i32
  }
  func.func @transform_4(%arg0: i32) -> (i32, i32) {
    %c0_i32 = arith.constant 0 : i32
    %c0_i32_0 = arith.constant 0 : i32
    return %arg0, %c0_i32 : i32, i32
  }
}

</mosaic_0001>

<bundles_post_ra>
// kernel: tpu_custom_call.1
= control target key start
LH: loop header
LB: loop body
LE: loop exit
PB: predicated region body
PF: predicated region fallthrough
CT: control target
= control target key end

     0   :  { %9 = vsyncpa [#allocation4], 0  ;;  %s2581_s0 = inlined_call_operand.hbm [shape: f32[32,128], index: 0, kind: input, shape index: {}]   ;;  %s2582_s1 = inlined_call_operand.hbm [shape: f32[128,384], index: 1, kind: input, shape index: {}]   ;;  %s2583_s2 = inlined_call_operand.hbm [shape: f32[128,128], index: 2, kind: input, shape index: {}]   ;;  %s2584_s3 = inlined_call_operand.vmem [shape: f32[1,128], index: 3, kind: input, shape index: {}]   ;;  %s2585_s4 = inlined_call_operand.hbm [shape: f32[32,128], index: 4, kind: output, shape index: {}]  }
   0x1   :  { %11 = vsyncpa [#allocation4 + $0x1], 0 }
   0x2   :  { %12 = vsyncpa [#allocation7], 0 }
   0x3   :  { %13 = vsyncpa [#allocation5], 0 }
   0x4   :  { %15 = vsyncpa [#allocation5 + $0x1], 0  ;;  %s2211_s15 = smov 0   ;;  %s2213_s16 = smov 0  }
   0x5   :  { %s2215_s17 = smov 0   ;;  %s2217_s18 = smov 0  }
   0x6 LB: > { %s2232_s19 = sadd.s32 4294967295, %s2170_s18   ;;  %s1485_s20 = sadd.s32 4294967294, %s2170_s18   ;;  %s2170_s18 = sphi %s2217_s18, %s2607_s18   ;;  %s2166_s17 = sphi %s2215_s17, %s2606_s17   ;;  %s2162_s16 = sphi %s2213_s16, %s2605_s16   ;;  %s2158_s15 = sphi %s2211_s15, %s2604_s15  }
   0x7   : > { %p41_p0 = scmp.ne.s32.totalorder %s2162_s16, %s2158_s15  ;;  %p2586_p1 = scmp.eq.s32.totalorder %s2232_s19, 0 }
   0x8   : > { %p134_p3 = scmp.eq.s32.totalorder %s1485_s20, 1  ;;  %p1486_p5 = scmp.ge.s32.totalorder %s2170_s18, 1 }
   0x9   : > { %p2241_p4 = por %p2586_p1, %p41_p0  ;;  %p141_p7 = scmp.lt.s32.totalorder %s2170_s18, 3 }
   0xa   : > { %p2246_p6 = por %p134_p3, %p41_p0  ;;  %s2172_s24 = smov [#allocation6]  }
   0xb   : > { %s2589_s21 = scalar_select %p2241_p4, 1, 0 }
   0xc   : > { %s2590_s22 = scalar_select %p2246_p6, 1, 0 }
   0xd   : > { %p2251_p8 = pnand %p1486_p5, %p141_p7  ;;  %s153_s25 = sshll.u32 %s2172_s24, 4  ;;  %s2255_s25 = int_to_ptr.vmem [resolvable:$true] %s153_s25 }
   0xe   : > { %s2173_s27 = smov [#allocation8]   ;;  %s2014_s5 = scalar_lea.hbm %s2582_s1, 6144 }
   0xf   : > { %p1872_p9 = pneg %p2251_p8  ;;  %s166_s28 = sshll.u32 %s2173_s27, 4  ;;  %s2266_s28 = int_to_ptr.vmem [resolvable:$true] %s166_s28 }
  0x10   : > { %p2015_p12 = scmp.ne.s32.totalorder %s2582_s1, %s2014_s5  ;;  %p2021_p5 = scmp.lt.u32.totalorder %s2014_s5, %s2582_s1 }
  0x11   : > { %p2262_p11 = pnand %p1872_p9, %p2586_p1 }
  0x13   : > { %p2016_p13 = pneg %p2262_p11 }
  0x15   : > { %p2017_p0 = pnand %p2016_p13, %p2015_p12 }
  0x17   : > { %p2018_p3 = pneg %p2017_p0 }
  0x19   : > { %p2023_p7 = pnand %p2021_p5, %p2018_p3 }
  0x1b   : > { %2026 = shalt.err (!%p2023_p7)
}
  0x1c   : > { %s2027_s10 = scalar_lea.vmem %s2255_s25, 6144  ;;  %p2035_p2 = scmp.lt.s32.totalorder %s2255_s25, %s2255_s25 }
  0x1d   : > { %p2028_p9 = scmp.ne.s32.totalorder %s2255_s25, %s2027_s10  ;;  %p2036_p12 = scmp.lt.s32.totalorder %s2027_s10, %s2027_s10 }
  0x1f   : > { %p2030_p10 = pnand %p2028_p9, %p2016_p13  ;;  %p2037_p0 = por %p2036_p12, %p2035_p2 }
  0x21   : > { %p2031_p1 = pneg %p2030_p10 }
  0x23   : > { %p2038_p6 = pnand %p2037_p0, %p2031_p1 }
  0x25   : > { %2041 = shalt.err (!%p2038_p6)
}
  0x26   : > { %s2174_s11 = smov 384   ;;  %s2175_s12 = smov 24  }
  0x27   : > { %1875 = dma.hbm_to_vmem [thread:$0]  (!%p2262_p11), %s2582_s1, 6144, %s2255_s25, [#allocation7], %s2174_s11, %s2174_s11, %s2175_s12  }
  0x28   : > { %s2042_s27 = scalar_lea.hbm %s2583_s2, 2048 }
  0x29   : > { %p2043_p2 = scmp.ne.s32.totalorder %s2583_s2, %s2042_s27  ;;  %p2049_p10 = scmp.lt.u32.totalorder %s2042_s27, %s2583_s2 }
  0x2b   : > { %p2045_p1 = pnand %p2043_p2, %p2016_p13 }
  0x2d   : > { %p2046_p6 = pneg %p2045_p1 }
  0x2f   : > { %p2051_p3 = pnand %p2049_p10, %p2046_p6 }
  0x31   : > { %2054 = shalt.err (!%p2051_p3)
}
  0x32   : > { %s2055_s25 = scalar_lea.vmem %s2266_s28, 2048  ;;  %p2063_p12 = scmp.lt.s32.totalorder %s2266_s28, %s2266_s28 }
  0x33   : > { %p2056_p5 = scmp.ne.s32.totalorder %s2266_s28, %s2055_s25  ;;  %p2064_p0 = scmp.lt.s32.totalorder %s2055_s25, %s2055_s25 }
  0x35   : > { %p2058_p7 = pnand %p2056_p5, %p2016_p13  ;;  %p2065_p2 = por %p2064_p0, %p2063_p12 }
  0x37   : > { %p2059_p9 = pneg %p2058_p7 }
  0x39   : > { %p2066_p1 = pnand %p2065_p2, %p2059_p9 }
  0x3b   : > { %2069 = shalt.err (!%p2066_p1)
}
  0x3c   : > { %s2176_s7 = smov 128   ;;  %s2177_s8 = smov 8  }
  0x3d   : > { %1878 = dma.hbm_to_vmem [thread:$0]  (!%p2262_p11), %s2583_s2, 2048, %s2266_s28, [#allocation7], %s2176_s7, %s2176_s7, %s2177_s8  }
  0x3e   : > { %s2324_s11 = sadd.s32 1, %s2170_s18   ;;  %s28_s13 = sadd.s32 1, %s2166_s17 }
  0x3f   : > { %s25_s12 = ssub.s32 %s2170_s18, %s2324_s11  ;;  %p35_p6 = scmp.ne.s32.totalorder %s2166_s17, %s2162_s16 }
  0x40   : > { %p26_p13 = scmp.eq.s32.totalorder %s25_s12, 0  ;;  %p36_p10 = scmp.eq.s32.totalorder %s2170_s18, 0 }
  0x41   : > { %p2593_p5 = scmp.eq.s32.totalorder %s2232_s19, 1  ;;  %p1889_p9 = scmp.lt.s32.totalorder %s2170_s18, 2 }
  0x42   : > { %s2333_s14 = scalar_select %p26_p13, %s2166_s17, %s28_s13  }
  0x43   : > { %p37_p3 = por %p36_p10, %p35_p6  ;;  %p2337_p7 = por %p2593_p5, %p35_p6 }
  0x44   : > { %s183_s20 = sand.u32 1, %s2166_s17   ;;  %s1528_s28 = sshll.u32 %s2170_s18, 8 }
  0x45   : > { %s2594_s26 = scalar_select %p2337_p7, 1, 0 }
  0x46   : > { %s1490_s24 = sshll.u32 %s183_s20, 4  ;;  %s2347_s30 = scalar_lea.hbm %s2581_s0, %s1528_s28 }
  0x47   : > { %s187_s5 = scalar_lea.vmem [#allocation3], %s1490_s24  ;;  %p2351_p11 = pnand %p1889_p9, %p37_p3 }
  0x48   : > { %s194_s6 = sshll.u32 %s187_s5, 4  ;;  %s2355_s9 = scalar_lea.sflag [#allocation4], %s183_s20  ;;  %s2349_s6 = int_to_ptr.vmem [resolvable:$true] %s194_s6 }
  0x49   : > { %s2070_s10 = scalar_lea.hbm %s2347_s30, 256  ;;  %p2072_p0 = pneg %p2351_p11 }
  0x4a   : > { %p2071_p12 = scmp.ne.s32.totalorder %s2347_s30, %s2070_s10  ;;  %s2075_s24 = scalar_lea.hbm %s2581_s0, 512 }
  0x4b   : > { %p2076_p13 = scmp.lt.u32.totalorder %s2347_s30, %s2581_s0  ;;  %p2077_p6 = scmp.lt.u32.totalorder %s2075_s24, %s2070_s10 }
  0x4c   : > { %p2073_p2 = pnand %p2072_p0, %p2071_p12  ;;  %p2079_p3 = scmp.lt.u32.totalorder %s2070_s10, %s2347_s30 }
  0x4d   : > { %p2078_p10 = por %p2077_p6, %p2076_p13 }
  0x4e   : > { %p2074_p1 = pneg %p2073_p2 }
  0x4f   : > { %p2080_p5 = por %p2079_p3, %p2078_p10 }
  0x51   : > { %p2081_p9 = pnand %p2080_p5, %p2074_p1 }
  0x53   : > { %2084 = shalt.err (!%p2081_p9)
}
  0x54   : > { %s2085_s20 = scalar_lea.vmem %s2349_s6, 256  ;;  %s2178_s29 = smov [#allocation3]  }
  0x55   : > { %p2086_p12 = scmp.ne.s32.totalorder %s2349_s6, %s2085_s20  ;;  %s2090_s5 = sshll.u32 %s2178_s29, 4  ;;  %s2091_s5 = int_to_ptr.vmem [resolvable:$false] %s2090_s5 }
  0x56   : > { %s2092_s12 = scalar_lea.vmem %s2091_s5, 512  ;;  %p2093_p4 = scmp.lt.s32.totalorder %s2349_s6, %s2091_s5 }
  0x57   : > { %p2088_p2 = pnand %p2086_p12, %p2072_p0  ;;  %p2094_p13 = scmp.lt.s32.totalorder %s2092_s12, %s2085_s20 }
  0x59   : > { %p2089_p7 = pneg %p2088_p2  ;;  %p2095_p6 = por %p2094_p13, %p2093_p4 }
  0x5b   : > { %p2096_p10 = pnand %p2095_p6, %p2089_p7 }
  0x5d   : > { %2099 = shalt.err (!%p2096_p10)
}
  0x5e   : > { %1882 = dma.hbm_to_vmem [thread:$0]  (!%p2351_p11), %s2347_s30, 256, %s2349_s6, %s2355_s9, %s2176_s7, %s2176_s7, %s2177_s8  }
  0x5f   : > { %206 = sbr.rel (%p2251_p8) target bundleno = 2077 (0x81d), region = 36  ;;  %s2389_s10 = sand.u32 (!%p2251_p8), 1, %s2162_s16  }
  0x60   : > { %s1494_s13 = sshll.u32 (!%p2251_p8), %s2389_s10, 4  ;;  %s209_s24 = scalar_lea.sflag (!%p2251_p8), [#allocation4], %s2389_s10 }
  0x61   : > { %s2395_s25 = scalar_lea.vmem (!%p2251_p8), [#allocation3], %s1494_s13  ;;  %p2596_p4 = scmp.ne.s32.totalorder (!%p2251_p8), %s2589_s21, 0 }
  0x66   : > { %2145 = dma.done.wait (%p2596_p4), %s209_s24, 256  }
  0x67   : > { %2147 = vsyncadd (%p2596_p4), %s209_s24, 4294967040  ;;  %p2597_p7 = scmp.eq.s32.totalorder %s2232_s19, 0 }
  0x69   : > { %2149 = dma.done.wait (%p2597_p7), [#allocation7], 8192   ;;  %p2598_p8 = pmov %p2597_p7 }
  0x6a   : > { %v2179_v0 = vmov 0.0   ;;  %v250_v1 = vld [vmem:[#allocation6 + $0x8] sm:$0xff]  ;;  %v253_v2 = vld [vmem:[#allocation6 + $0x20] sm:$0xff]  ;;  %v252_v5 = vld [vmem:[#allocation6 + $0x18] sm:$0xff]  ;;  %vm466_vm0 = vcmask 261120   ;;  %s2180_s21 = smov 96  }
  0x6b   : > { %2151 = vsyncadd (%p2598_p8), [#allocation7], 4294959104  ;;  %378 = vmatprep.mubr.f32.mxu0 %v2179_v0  ;;  %v249_v3 = vld [vmem:[#allocation6] sm:$0xff]  ;;  %v1724_v4 = vpack.c.bf16 %v253_v2, %v250_v1  ;;  %v256_v6 = vld [vmem:[#allocation6 + $0x38] sm:$0xff]  ;;  %s2181_s23 = smov 64   ;;  %vm554_vm2 = vcmask 130048  }
  0x6c   : > { %v259_v7 = vld [vmem:[#allocation6 + $0x50] sm:$0xff]  ;;  %v1726_v8 = vpack.c.bf16 %v252_v5, %v249_v3  ;;  %v258_v11 = vld [vmem:[#allocation6 + $0x48] sm:$0xff]  ;;  %v265_v13 = vld [vmem:[#allocation6 + $0x80] sm:$0xff]  ;;  %s2182_s7 = smov 32   ;;  %vm1286_vm3 = vcmask 523264   ;;  %vm1289_vm4 = vcmask 785408  }
  0x6d   : > { %v1728_v9 = vpack.c.bf16 %v259_v7, %v256_v6  ;;  %v255_v10 = vld [vmem:[#allocation6 + $0x30] sm:$0xff]  ;;  %v262_v12 = vld [vmem:[#allocation6 + $0x68] sm:$0xff]  ;;  %1725 = vmatprep.subr.bf16.mxu0 %v1724_v4  ;;  %v261_v16 = vld [vmem:[#allocation6 + $0x60] sm:$0xff]  ;;  %s244_s8 = scalar_lea.vmem [#allocation9], %s1494_s13  ;;  %s1529_s28 = sshll.u32 %s2232_s19, 8 }
  0x6e   : > { %1727 = vmatpush1.bf16.msra.mxu0 %v1726_v8  ;;  %v1730_v14 = vpack.c.bf16 %v258_v11, %v255_v10  ;;  %v1732_v15 = vpack.c.bf16 %v265_v13, %v262_v12  ;;  %v264_v17 = vld [vmem:[#allocation6 + $0x78] sm:$0xff]  ;;  %v271_v19 = vld [vmem:[#allocation6 + $0xb0] sm:$0xff]  ;;  %v270_v23 = vld [vmem:[#allocation6 + $0xa8] sm:$0xff]  ;;  %s1393_s30 = sshll.u32 %s244_s8, 4  ;;  %s2537_s29 = scalar_lea.hbm %s2585_s4, %s1529_s28  ;;  %s2532_s30 = int_to_ptr.vmem [resolvable:$true] %s1393_s30 }
  0x6f   : > { %1729 = vmatprep.subr.bf16.mxu0 %v1728_v9  ;;  %v268_v18 = vld [vmem:[#allocation6 + $0x98] sm:$0xff]  ;;  %v1734_v20 = vpack.c.bf16 %v264_v17, %v261_v16  ;;  %v267_v22 = vld [vmem:[#allocation6 + $0x90] sm:$0xff]  ;;  %v274_v24 = vld [vmem:[#allocation6 + $0xc8] sm:$0xff]  ;;  %s1380_s5 = scalar_lea.sflag [#allocation5], %s2389_s10  ;;  %s2100_s12 = scalar_lea.vmem %s2532_s30, 256 }
  0x70   : > { %v1736_v21 = vpack.c.bf16 %v271_v19, %v268_v18  ;;  %v277_v25 = vld [vmem:[#allocation6 + $0xe0] sm:$0xff]  ;;  %v251_v27 = vld [vmem:[#allocation6 + $0x10] sm:$0xff]  ;;  %v254_v28 = vld [vmem:[#allocation6 + $0x28] sm:$0xff]  ;;  %v1738_v29 = vpack.c.bf16 %v270_v23, %v267_v22  ;;  %p2101_p11 = scmp.ne.s32.totalorder %s2532_s30, %s2100_s12  ;;  %p2601_p0 = scmp.ne.s32.totalorder %s2594_s26, 0 }
  0x71   : > { %v2407_v26 = vld [vmem:[%s2395_s25] sm:$0xff]  ;;  %v1756_v31 = vpack.c.bf16 %v254_v28, %v251_v27  ;;  %v260_v33 = vld [vmem:[#allocation6 + $0x58] sm:$0xff]  ;;  %v1740_v34 = vpack.c.bf16 %v277_v25, %v274_v24  ;;  %v266_v38 = vld [vmem:[#allocation6 + $0x88] sm:$0xff]  ;;  %s2183_s19 = smov [#allocation9]  }
  0x72   : > { %1731 = vmatpush1.bf16.msra.mxu0 %v1730_v14  ;;  %1630 = vmatprep.mubr.f32.mxu1 %v2407_v26  ;;  %v273_v30 = vld [vmem:[#allocation6 + $0xc0] sm:$0xff]  ;;  %v276_v35 = vld [vmem:[#allocation6 + $0xd8] sm:$0xff]  ;;  %v263_v37 = vld [vmem:[#allocation6 + $0x70] sm:$0xff]  ;;  %p2102_p1 = pnand %p2101_p11, %p2601_p0  ;;  %s2104_s13 = sshll.u32 %s2183_s19, 4  ;;  %s2105_s13 = int_to_ptr.vmem [resolvable:$false] %s2104_s13 }
  0x73   : > { %1733 = vmatprep.subr.bf16.mxu0 %v1732_v15  ;;  %v257_v32 = vld [vmem:[#allocation6 + $0x40] sm:$0xff]  ;;  %v280_v39 = vld [vmem:[#allocation6 + $0xf8] sm:$0xff]  ;;  %v283_v40 = vld [vmem:[#allocation6 + $0x110] sm:$0xff]  ;;  %1757 = vmatprep.subr.bf16.mxu1 %v1756_v31  ;;  %v1742_v41 = vpack.c.bf16 %v276_v35, %v273_v30  ;;  %v1764_v43 = vpack.c.bf16 %v266_v38, %v263_v37  ;;  %s2106_s24 = scalar_lea.vmem %s2105_s13, 512  ;;  %p2107_p5 = scmp.lt.s32.totalorder %s2532_s30, %s2105_s13 }
  0x74   : > { %v1760_v36 = vpack.c.bf16 %v260_v33, %v257_v32  ;;  %1759 = vmatpush3.bf16.msra.mxu1 %v1756_v31  ;;  %v279_v42 = vld [vmem:[#allocation6 + $0xf0] sm:$0xff]  ;;  %v1744_v44 = vpack.c.bf16 %v283_v40, %v280_v39  ;;  %v282_v45 = vld [vmem:[#allocation6 + $0x108] sm:$0xff]  ;;  %v269_v46 = vld [vmem:[#allocation6 + $0xa0] sm:$0xff]  ;;  %p2103_p3 = pneg %p2102_p1  ;;  %p2108_p9 = scmp.lt.s32.totalorder %s2106_s24, %s2100_s12 }
  0x75   : > { %v272_v47 = vld [vmem:[#allocation6 + $0xb8] sm:$0xff]  ;;  %v286_v48 = vld [vmem:[#allocation6 + $0x128] sm:$0xff]  ;;  %v289_v49 = vld [vmem:[#allocation6 + $0x140] sm:$0xff]  ;;  %v1746_v50 = vpack.c.bf16 %v282_v45, %v279_v42 }
  0x76   : > { %1735 = vmatpush1.bf16.msra.mxu0 %v1734_v20  ;;  %1761 = vmatprep.subr.bf16.mxu1 %v1760_v36  ;;  %v285_v51 = vld [vmem:[#allocation6 + $0x120] sm:$0xff]  ;;  %v1768_v52 = vpack.c.bf16 %v272_v47, %v269_v46  ;;  %v1748_v53 = vpack.c.bf16 %v289_v49, %v286_v48  ;;  %v288_v54 = vld [vmem:[#allocation6 + $0x138] sm:$0xff]  ;;  %v275_v55 = vld [vmem:[#allocation6 + $0xd0] sm:$0xff]  ;;  %p2109_p12 = por %p2108_p9, %p2107_p5 }
  0x77   : > { %1737 = vmatprep.subr.bf16.mxu0 %v1736_v21  ;;  %v278_v56 = vld [vmem:[#allocation6 + $0xe8] sm:$0xff]  ;;  %v292_v57 = vld [vmem:[#allocation6 + $0x158] sm:$0xff]  ;;  %v295_v58 = vld [vmem:[#allocation6 + $0x170] sm:$0xff]  ;;  %v1750_v59 = vpack.c.bf16 %v288_v54, %v285_v51 }
  0x78   : > { %1763 = vmatpush3.bf16.msra.mxu1 %v1760_v36  ;;  %v291_v60 = vld [vmem:[#allocation6 + $0x150] sm:$0xff]  ;;  %v1772_v61 = vpack.c.bf16 %v278_v56, %v275_v55  ;;  %v1752_v62 = vpack.c.bf16 %v295_v58, %v292_v57  ;;  %v294_v63 = vld [vmem:[#allocation6 + $0x168] sm:$0xff]  ;;  %v281_v1 = vld [vmem:[#allocation6 + $0x100] sm:$0xff]  ;;  %p2110_p2 = pnand %p2109_p12, %p2103_p3 }
  0x79   : > { %1765 = vmatprep.subr.bf16.mxu1 %v1764_v43  ;;  %v284_v2 = vld [vmem:[#allocation6 + $0x118] sm:$0xff]  ;;  %v1754_v3 = vpack.c.bf16 %v294_v63, %v291_v60  ;;  %v287_v5 = vld [vmem:[#allocation6 + $0x130] sm:$0xff]  ;;  %v290_v6 = vld [vmem:[#allocation6 + $0x148] sm:$0xff] }
  0x7a   : > { %1739 = vmatpush1.bf16.msra.mxu0 %v1738_v29  ;;  %v1776_v4 = vpack.c.bf16 %v284_v2, %v281_v1  ;;  %v1780_v7 = vpack.c.bf16 %v290_v6, %v287_v5  ;;  %v293_v8 = vld [vmem:[#allocation6 + $0x160] sm:$0xff]  ;;  %v296_v9 = vld [vmem:[#allocation6 + $0x178] sm:$0xff]  ;;  %vm2421_vm1 = vmpackc.low %vm466_vm0, %vm466_vm0 }
  0x7b   : > { %1741 = vmatprep.subr.bf16.mxu0 %v1740_v34  ;;  %v248_v10 = vld [vmem:[%s2395_s25 + $0x8] sm:$0xff]  ;;  %v1784_v11 = vpack.c.bf16 %v296_v9, %v293_v8 }
  0x7c   : > { %1767 = vmatpush3.bf16.msra.mxu1 %v1764_v43 }
  0x7d   : > { %1769 = vmatprep.subr.bf16.mxu1 %v1768_v52 }
  0x7e   : > { %1743 = vmatpush1.bf16.msra.mxu0 %v1742_v41 }
  0x7f   : > { %1745 = vmatprep.subr.bf16.mxu0 %v1744_v44 }
  0x80   : > { %1771 = vmatpush3.bf16.msra.mxu1 %v1768_v52 }
  0x81   : > { %1773 = vmatprep.subr.bf16.mxu1 %v1772_v61 }
  0x82   : > { %1747 = vmatpush1.bf16.msra.mxu0 %v1746_v50 }
  0x83   : > { %1749 = vmatprep.subr.bf16.mxu0 %v1748_v53 }
  0x84   : > { %1775 = vmatpush3.bf16.msra.mxu1 %v1772_v61 }
  0x85   : > { %1777 = vmatprep.subr.bf16.mxu1 %v1776_v4 }
  0x86   : > { %1751 = vmatpush1.bf16.msra.mxu0 %v1750_v59 }
  0x87   : > { %1753 = vmatprep.subr.bf16.mxu0 %v1752_v62 }
  0x88   : > { %1779 = vmatpush3.bf16.msra.mxu1 %v1776_v4 }
  0x89   : > { %1781 = vmatprep.subr.bf16.mxu1 %v1780_v7 }
  0x8a   : > { %1755 = vmatpush1.bf16.msra.mxu0 %v1754_v3 }
  0x8c   : > { %1783 = vmatpush3.bf16.msra.mxu1 %v1780_v7 }
  0x8d   : > { %379 = vmatmul.mubr.f32.vlgmr.msra.gmra.mrb[0].mxu0 %v2407_v26  ;;  %1785 = vmatprep.subr.bf16.mxu1 %v1784_v11 }
  0x8e   : > { %384 = vmatprep.mubr.f32.mxu0 %v2179_v0 }
  0x90   : > { %1787 = vmatpush3.bf16.msra.mxu1 %v1784_v11 }
  0x91   : > { %385 = vmatmul.mubr.f32.gmra.mrb[2].mxu0 %v248_v10 }
  0x93   : > { %1631 = vmatmul.mubr.f32.vlgmr.msra.gmra.mrb[0].mxu1 %v248_v10 }
 0x160   : > { %v2413_v12 = vpop.f32.mrb[0].mxu0 }
 0x161   : > { %v382_v13 = vpop.f32.mrb[1].mxu0  ;;  %1637 = vmatprep.mubr.msk.f32.mxu1 %vm466_vm0, %v2413_v12 }
 0x164   : > { %v2417_v14 = vpop.f32.mrb[2].mxu0 }
 0x165   : > { %v388_v15 = vpop.f32.mrb[3].mxu0 }
 0x166   : > { %v1788_v16 = vpack.c.bf16 %v388_v15, %v382_v13  ;;  %v2425_v17 = vpack.i.bf16 %v388_v15, %v382_v13  ;;  %v1632_v18 = vpop.f32.mrb[0].mxu1 }
 0x167   : > { %v457_v19 = vpop.f32.mrb[1].mxu1 }
 0x168   : > { %1938 = vrot.lane.b32.xlu1 %v2425_v17, %s2180_s21  ;;  %1790 = vmatprep.subr.msk.bf16.mxu1 %vm2421_vm1, %v1788_v16  ;;  %v1794_v20 = vpack.c.bf16 %v1632_v18, %v457_v19  ;;  %v2435_v21 = vpack.i.bf16 %v1632_v18, %v457_v19 }
 0x169   : > { %1793 = vmatpush3.bf16.xpose.msk.msra.mxu1 %vm2421_vm1, %v1788_v16 }
 0x16a   : > { %1795 = vmatprep.subr.bf16.mxu1 %v1794_v20 }
 0x16c   : > { %1943 = vrot.lane.b32.xlu1 %v2425_v17, %s2181_s23 }
 0x170   : > { %660 = vrot.lane.b32.xlu1 %v2417_v14, %s2180_s21  ;;  %1638 = vmatmul.mubr.msk.f32.vlgmr.msra.gmra.mrb[2].mxu1 %vm466_vm0, %v2417_v14 }
 0x171   : > { %1797 = vmatpush3.bf16.msra.mxu1 %v1794_v20 }
 0x174   : > { %860 = vrot.lane.b32.xlu1 %v2413_v12, %s2181_s23 }
 0x178   : > { %862 = vrot.lane.b32.xlu1 %v2417_v14, %s2181_s23 }
 0x17c   : > { %1948 = vrot.lane.b32.xlu1 %v2435_v21, %s2181_s23 }
 0x1da   : > { %v1939_v22 = vpop.permute.xlu1 %1938 }
 0x1db   : > { %v1941_v23 = vunpack.i.h.bf16 %v1939_v22  ;;  %v1940_v24 = vunpack.i.l.bf16 %v1939_v22 }
 0x1dd   : > { %v1798_v25 = vpack.c.bf16 %v1941_v23, %v1940_v24 }
 0x1de   : > { %v1944_v30 = vpop.permute.xlu1 %1943 }
 0x1df   : > { %1800 = vmatprep.subr.msk.bf16.mxu1 %vm2421_vm1, %v1798_v25  ;;  %v1946_v40 = vunpack.i.h.bf16 %v1944_v30  ;;  %v1945_v41 = vunpack.i.l.bf16 %v1944_v30 }
 0x1e1   : > { %v1808_v44 = vpack.c.bf16 %v1946_v40, %v1945_v41 }
 0x1e2   : > { %v661_v35 = vpop.permute.xlu1 %660 }
 0x1e6   : > { %v861_v38 = vpop.permute.xlu1 %860 }
 0x1ea   : > { %v863_v42 = vpop.permute.xlu1 %862 }
 0x1ee   : > { %v1949_v46 = vpop.permute.xlu1 %1948 }
 0x1ef   : > { %v1951_v47 = vunpack.i.h.bf16 %v1949_v46  ;;  %v1950_v48 = vunpack.i.l.bf16 %v1949_v46 }
 0x1f1   : > { %v1814_v49 = vpack.c.bf16 %v1951_v47, %v1950_v48 }
 0x243   : > { %v1639_v26 = vpop.f32.mrb[2].mxu1 }
 0x244   : > { %v545_v27 = vpop.f32.mrb[3].mxu1  ;;  %v558_v29 = vsel %vm554_vm2, %v1639_v26, -inf }
 0x245   : > { %v555_v28 = vsel %vm554_vm2, %v545_v27, -inf }
 0x246   : > { %556 = vmax.xlane.f32.xlu0 %v555_v28 }
 0x24a   : > { %559 = vmax.xlane.f32.xlu0 %v558_v29 }
 0x260   : > { %658 = vrot.lane.b32.xlu0 %v2413_v12, %s2180_s21 }
 0x2d3   : > { %v557_v31 = vpop.xlane.xlu0 %556 }
 0x2d4   : > { %v561_v32 = vsub.f32 %v545_v27, %v557_v31 }
 0x2d6   : > { %v563_v33 = vmul.f32 1.442695, %v561_v32 }
 0x2d7   : > { %v560_v34 = vpop.xlane.xlu0 %559 }
 0x2d8   : > { %1982 = vpow2.f32 %v563_v33  ;;  %v562_v36 = vsub.f32 %v1639_v26, %v560_v34 }
 0x2da   : > { %v565_v37 = vmul.f32 1.442695, %v562_v36 }
 0x2db   : > { %v659_v45 = vpop.permute.xlu0 %658 }
 0x2dc   : > { %1984 = vpow2.f32 %v565_v37 }
 0x2e2   : > { %v2453_v39 = vpop.eup %1982 }
 0x2e3   : > { %1644 = vmatprep.mubr.msk.f32.mxu1 %vm554_vm2, %v2453_v39 }
 0x2e6   : > { %v2457_v43 = vpop.eup %1984 }
 0x2e7   : > { %1645 = vmatmul.mubr.msk.f32.vlgmr.msra.gmra.mrb[4].mxu1 %vm554_vm2, %v2457_v43  ;;  %v570_v48 = vsel %vm554_vm2, %v2457_v43, 0.0  ;;  %v297_v43 = vld [vmem:[#allocation8] sm:$0xff] }
 0x2e8   : > { %1803 = vmatpush3.bf16.xpose.msk.msra.mxu1 %vm2421_vm1, %v1798_v25  ;;  %1651 = vmatprep.mubr.msk.f32.mxu1 %vm466_vm0, %v659_v45 }
 0x2e9   : > { %1810 = vmatprep.subr.msk.bf16.mxu1 %vm2421_vm1, %v1808_v44 }
 0x2ef   : > { %1652 = vmatmul.mubr.msk.f32.vlgmr.msra.gmra.mrb[6].mxu1 %vm466_vm0, %v661_v35 }
 0x2f0   : > { %1813 = vmatpush3.bf16.xpose.msk.msra.mxu1 %vm2421_vm1, %v1808_v44  ;;  %1665 = vmatprep.mubr.msk.f32.mxu1 %vm466_vm0, %v861_v38 }
 0x2f1   : > { %1815 = vmatprep.subr.bf16.mxu1 %v1814_v49 }
 0x2f7   : > { %1666 = vmatmul.mubr.msk.f32.vlgmr.msra.gmra.mrb[8].mxu1 %vm466_vm0, %v863_v42 }
 0x2f8   : > { %1817 = vmatpush3.bf16.msra.mxu1 %v1814_v49  ;;  %v567_v49 = vsel %vm554_vm2, %v2453_v39, 0.0 }
 0x3ba   : > { %v2471_v50 = vpop.f32.mrb[4].mxu1 }
 0x3bb   : > { %v2473_v51 = vpop.f32.mrb[5].mxu1 }
 0x3c2   : > { %v1653_v52 = vpop.f32.mrb[6].mxu1 }
 0x3c3   : > { %v740_v53 = vpop.f32.mrb[7].mxu1  ;;  %v752_v58 = vsel %vm554_vm2, %v1653_v52, -inf }
 0x3c4   : > { %v749_v59 = vsel %vm554_vm2, %v740_v53, -inf }
 0x3ca   : > { %v1667_v54 = vpop.f32.mrb[8].mxu1 }
 0x3cb   : > { %v942_v55 = vpop.f32.mrb[9].mxu1  ;;  %v954_v56 = vsel %vm554_vm2, %v1667_v54, -inf }
 0x3cc   : > { %955 = vmax.xlane.f32.xlu0 %v954_v56  ;;  %v951_v57 = vsel %vm554_vm2, %v942_v55, -inf }
 0x3cd   : > { %952 = vmax.xlane.f32.xlu1 %v951_v57 }
 0x3de   : > { %1060 = vrot.lane.b32.xlu1 %v2413_v12, %s2182_s7 }
 0x3e2   : > { %1953 = vrot.lane.b32.xlu0 %v2425_v17, %s2182_s7  ;;  %1062 = vrot.lane.b32.xlu1 %v2417_v14, %s2182_s7 }
 0x401   : > { %753 = vmax.xlane.f32.xlu0 %v752_v58 }
 0x406   : > { %750 = vmax.xlane.f32.xlu1 %v749_v59 }
 0x459   : > { %v956_v60 = vpop.xlane.xlu0 %955 }
 0x45a   : > { %v958_v61 = vsub.f32 %v1667_v54, %v956_v60  ;;  %v953_v62 = vpop.xlane.xlu1 %952 }
 0x45b   : > { %v957_v63 = vsub.f32 %v942_v55, %v953_v62  ;;  %v299_v62 = vld [vmem:[#allocation8 + $0x10] sm:$0xff] }
 0x45c   : > { %v961_v1 = vmul.f32 1.442695, %v958_v61  ;;  %v298_v61 = vld [vmem:[#allocation8 + $0x8] sm:$0xff] }
 0x45d   : > { %v959_v2 = vmul.f32 1.442695, %v957_v63  ;;  %v1954_v3 = vpop.permute.xlu0 %1953  ;;  %v1828_v39 = vpack.c.bf16 %v298_v61, %v297_v43  ;;  %v300_v63 = vld [vmem:[#allocation8 + $0x18] sm:$0xff] }
 0x45e   : > { %v1956_v4 = vunpack.i.h.bf16 %v1954_v3  ;;  %v1955_v5 = vunpack.i.l.bf16 %v1954_v3  ;;  %v1061_v9 = vpop.permute.xlu1 %1060  ;;  %v302_v3 = vld [vmem:[#allocation8 + $0x28] sm:$0xff] }
 0x45f   : > { %1986 = vpow2.f32 %v959_v2  ;;  %v301_v2 = vld [vmem:[#allocation8 + $0x20] sm:$0xff] }
 0x460   : > { %1988 = vpow2.f32 %v961_v1  ;;  %v1818_v6 = vpack.c.bf16 %v1956_v4, %v1955_v5  ;;  %v1832_v1 = vpack.c.bf16 %v300_v63, %v299_v62  ;;  %v1836_v4 = vpack.c.bf16 %v302_v3, %v301_v2  ;;  %v303_v5 = vld [vmem:[#allocation8 + $0x30] sm:$0xff] }
 0x462   : > { %1820 = vmatprep.subr.msk.bf16.mxu1 %vm2421_vm1, %v1818_v6  ;;  %v1063_v10 = vpop.permute.xlu1 %1062 }
 0x469   : > { %v1987_v7 = vpop.eup %1986 }
 0x46a   : > { %v1989_v8 = vpop.eup %1988  ;;  %1672 = vmatprep.mubr.msk.f32.mxu1 %vm554_vm2, %v1987_v7  ;;  %v963_v28 = vsel %vm554_vm2, %v1987_v7, 0.0 }
 0x46b   : > { %1673 = vmatmul.mubr.msk.f32.vlgmr.msra.gmra.mrb[10].mxu1 %vm554_vm2, %v1989_v8  ;;  %v966_v27 = vsel %vm554_vm2, %v1989_v8, 0.0  ;;  %v305_v8 = vld [vmem:[#allocation8 + $0x40] sm:$0xff] }
 0x46c   : > { %1823 = vmatpush3.bf16.xpose.msk.msra.mxu1 %vm2421_vm1, %v1818_v6  ;;  %1679 = vmatprep.mubr.msk.f32.mxu1 %vm466_vm0, %v1061_v9  ;;  %v304_v6 = vld [vmem:[#allocation8 + $0x38] sm:$0xff]  ;;  %v306_v9 = vld [vmem:[#allocation8 + $0x48] sm:$0xff] }
 0x46d   : > { %v1840_v7 = vpack.c.bf16 %v304_v6, %v303_v5 }
 0x473   : > { %1680 = vmatmul.mubr.msk.f32.vlgmr.msra.gmra.mrb[12].mxu1 %vm466_vm0, %v1063_v10  ;;  %v1844_v10 = vpack.c.bf16 %v306_v9, %v305_v8 }
 0x48e   : > { %v754_v20 = vpop.xlane.xlu0 %753 }
 0x48f   : > { %v756_v22 = vsub.f32 %v1653_v52, %v754_v20 }
 0x491   : > { %v759_v23 = vmul.f32 1.442695, %v756_v22 }
 0x493   : > { %v751_v11 = vpop.xlane.xlu1 %750 }
 0x494   : > { %v755_v12 = vsub.f32 %v740_v53, %v751_v11  ;;  %v307_v11 = vld [vmem:[#allocation8 + $0x50] sm:$0xff] }
 0x496   : > { %v757_v13 = vmul.f32 1.442695, %v755_v12  ;;  %v308_v12 = vld [vmem:[#allocation8 + $0x58] sm:$0xff] }
 0x498   : > { %1990 = vpow2.f32 %v757_v13  ;;  %v1848_v13 = vpack.c.bf16 %v308_v12, %v307_v11 }
 0x499   : > { %1992 = vpow2.f32 %v759_v23 }
 0x4a2   : > { %v1991_v14 = vpop.eup %1990 }
 0x4a3   : > { %1658 = vmatprep.mubr.msk.f32.mxu0 %vm554_vm2, %v1991_v14  ;;  %v1993_v24 = vpop.eup %1992  ;;  %v761_v25 = vsel %vm554_vm2, %v1991_v14, 0.0  ;;  %v309_v14 = vld [vmem:[#allocation8 + $0x60] sm:$0xff] }
 0x4a4   : > { %v764_v26 = vsel %vm554_vm2, %v1993_v24, 0.0 }
 0x53e   : > { %v2494_v15 = vpop.f32.mrb[10].mxu1 }
 0x53f   : > { %v2496_v16 = vpop.f32.mrb[11].mxu1 }
 0x546   : > { %v1681_v17 = vpop.f32.mrb[12].mxu1 }
 0x547   : > { %v1142_v18 = vpop.f32.mrb[13].mxu1  ;;  %v1154_v0 = vsel %vm554_vm2, %v1681_v17, -inf }
 0x548   : > { %1155 = vmax.xlane.f32.xlu1 %v1154_v0  ;;  %v1151_v19 = vsel %vm554_vm2, %v1142_v18, -inf  ;;  %v311_v0 = vld [vmem:[#allocation8 + $0x70] sm:$0xff] }
 0x549   : > { %1152 = vmax.xlane.f32.xlu0 %v1151_v19  ;;  %v312_v19 = vld [vmem:[#allocation8 + $0x78] sm:$0xff] }
 0x54a   : > { %v1856_v20 = vpack.c.bf16 %v312_v19, %v311_v0 }
 0x559   : > { %1963 = vrot.lane.b32.xlu1 %v2435_v21, %s2182_s7 }
 0x55f   : > { %1958 = vrot.lane.b32.xlu0 %v2435_v21, %s2180_s21 }
 0x57d   : > { %762 = vadd.xlane.f32.xlu1 %v761_v25 }
 0x57e   : > { %765 = vadd.xlane.f32.xlu0 %v764_v26 }
 0x581   : > { %967 = vadd.xlane.f32.xlu1 %v966_v27 }
 0x582   : > { %964 = vadd.xlane.f32.xlu0 %v963_v28 }
 0x5d5   : > { %v1156_v29 = vpop.xlane.xlu1 %1155 }
 0x5d6   : > { %v1158_v30 = vsub.f32 %v1681_v17, %v1156_v29  ;;  %v1153_v21 = vpop.xlane.xlu0 %1152 }
 0x5d7   : > { %v1157_v31 = vsub.f32 %v1142_v18, %v1153_v21 }
 0x5d8   : > { %v1161_v32 = vmul.f32 1.442695, %v1158_v30 }
 0x5d9   : > { %v1159_v33 = vmul.f32 1.442695, %v1157_v31  ;;  %v1964_v34 = vpop.permute.xlu1 %1963 }
 0x5da   : > { %1994 = vpow2.f32 %v1161_v32  ;;  %v1966_v35 = vunpack.i.h.bf16 %v1964_v34  ;;  %v1959_v36 = vpop.permute.xlu0 %1958  ;;  %v1965_v37 = vunpack.i.l.bf16 %v1964_v34 }
 0x5db   : > { %1996 = vpow2.f32 %v1159_v33  ;;  %v1961_v38 = vunpack.i.h.bf16 %v1959_v36  ;;  %v1960_v40 = vunpack.i.l.bf16 %v1959_v36 }
 0x5dc   : > { %v1824_v42 = vpack.c.bf16 %v1966_v35, %v1965_v37 }
 0x5dd   : > { %v1804_v41 = vpack.c.bf16 %v1961_v38, %v1960_v40 }
 0x5df   : > { %1805 = vmatprep.subr.bf16.mxu0 %v1804_v41 }
 0x5e0   : > { %1807 = vmatpush3.bf16.msra.mxu0 %v1804_v41 }
 0x5e1   : > { %1825 = vmatprep.subr.bf16.mxu0 %v1824_v42 }
 0x5e3   : > { %1659 = vmatmul.mubr.msk.f32.vlgmr.msra.gmra.mrb[4].mxu0 %vm554_vm2, %v1993_v24 }
 0x5e4   : > { %v1995_v44 = vpop.eup %1994  ;;  %1827 = vmatpush3.bf16.msra.mxu0 %v1824_v42 }
 0x5e5   : > { %v1997_v45 = vpop.eup %1996  ;;  %v1166_v46 = vsel %vm554_vm2, %v1995_v44, 0.0  ;;  %1829 = vmatprep.subr.bf16.mxu0 %v1828_v39 }
 0x5e6   : > { %1686 = vmatprep.mubr.msk.f32.mxu0 %vm554_vm2, %v1997_v45  ;;  %1167 = vadd.xlane.f32.xlu1 %v1166_v46  ;;  %v1163_v47 = vsel %vm554_vm2, %v1997_v45, 0.0 }
 0x5e7   : > { %1164 = vadd.xlane.f32.xlu0 %v1163_v47  ;;  %1687 = vmatmul.mubr.msk.f32.vlgmr.msra.gmra.mrb[6].mxu0 %vm554_vm2, %v1995_v44 }
 0x5e8   : > { %1831 = vmatpush3.bf16.msra.mxu0 %v1828_v39 }
 0x5e9   : > { %1833 = vmatprep.subr.bf16.mxu0 %v1832_v1 }
 0x5ea   : > { %571 = vadd.xlane.f32.xlu1 %v570_v48 }
 0x5eb   : > { %568 = vadd.xlane.f32.xlu0 %v567_v49 }
 0x5ec   : > { %1835 = vmatpush3.bf16.msra.mxu0 %v1832_v1 }
 0x5ed   : > { %1837 = vmatprep.subr.bf16.mxu0 %v1836_v4 }
 0x5f0   : > { %1839 = vmatpush3.bf16.msra.mxu0 %v1836_v4 }
 0x5f1   : > { %1841 = vmatprep.subr.bf16.mxu0 %v1840_v7 }
 0x5f4   : > { %1843 = vmatpush3.bf16.msra.mxu0 %v1840_v7 }
 0x5f5   : > { %1845 = vmatprep.subr.bf16.mxu0 %v1844_v10 }
 0x5f8   : > { %1847 = vmatpush3.bf16.msra.mxu0 %v1844_v10 }
 0x5f9   : > { %1849 = vmatprep.subr.bf16.mxu0 %v1848_v13 }
 0x5fc   : > { %1851 = vmatpush3.bf16.msra.mxu0 %v1848_v13 }
 0x60a   : > { %v763_v52 = vpop.xlane.xlu1 %762 }
 0x60b   : > { %v766_v53 = vpop.xlane.xlu0 %765 }
 0x60e   : > { %v968_v54 = vpop.xlane.xlu1 %967 }
 0x60f   : > { %1998 = vrcp.f32 %v968_v54  ;;  %v965_v55 = vpop.xlane.xlu0 %964 }
 0x610   : > { %2000 = vrcp.f32 %v965_v55 }
 0x611   : > { %2002 = vrcp.f32 %v766_v53 }
 0x612   : > { %2004 = vrcp.f32 %v763_v52 }
 0x619   : > { %v1999_v56 = vpop.eup %1998 }
 0x61a   : > { %v2001_v57 = vpop.eup %2000  ;;  %v1059_v58 = vmul.f32 %v1999_v56, %v2494_v15  ;;  %v310_v15 = vld [vmem:[#allocation8 + $0x68] sm:$0xff] }
 0x61b   : > { %v1058_v59 = vmul.f32 %v2001_v57, %v2496_v16  ;;  %v1852_v17 = vpack.c.bf16 %v310_v15, %v309_v14  ;;  %v2003_v22 = vpop.eup %2002 }
 0x61c   : > { %v2005_v24 = vpop.eup %2004 }
 0x61d   : > { %v1972_v60 = vpack.i.bf16 %v1059_v58, %v1058_v59  ;;  %1853 = vmatprep.subr.bf16.mxu0 %v1852_v17 }
 0x61e   : > { %1855 = vmatpush3.bf16.msra.mxu0 %v1852_v17 }
 0x61f   : > { %1973 = vrot.lane.b32.xlu1 %v1972_v60, %s2181_s23  ;;  %1857 = vmatprep.subr.bf16.mxu0 %v1856_v20 }
 0x622   : > { %1859 = vmatpush3.bf16.msra.mxu0 %v1856_v20 }
 0x673   : > { %v1168_v16 = vpop.xlane.xlu1 %1167 }
 0x674   : > { %v1165_v18 = vpop.xlane.xlu0 %1164  ;;  %2006 = vrcp.f32 %v1168_v16 }
 0x675   : > { %2008 = vrcp.f32 %v1165_v18 }
 0x677   : > { %v572_v35 = vpop.xlane.xlu1 %571 }
 0x678   : > { %v569_v36 = vpop.xlane.xlu0 %568  ;;  %2010 = vrcp.f32 %v572_v35 }
 0x679   : > { %2012 = vrcp.f32 %v569_v36 }
 0x67e   : > { %v2007_v28 = vpop.eup %2006 }
 0x67f   : > { %v2009_v21 = vpop.eup %2008 }
 0x682   : > { %v2011_v37 = vpop.eup %2010 }
 0x683   : > { %v2013_v38 = vpop.eup %2012  ;;  %v657_v46 = vmul.f32 %v2011_v37, %v2471_v50  ;;  %v1522_v50 = vld [vmem:[%s2584_s3] ss:$0 sm:$0xff] }
 0x684   : > { %v656_v42 = vmul.f32 %v2013_v38, %v2473_v51 }
 0x691   : > { %v1974_v40 = vpop.permute.xlu1 %1973 }
 0x692   : > { %v1976_v49 = vunpack.i.h.bf16 %v1974_v40  ;;  %v1975_v52 = vunpack.i.l.bf16 %v1974_v40 }
 0x6b6   : > { %v1660_v23 = vpop.f32.mrb[4].mxu0 }
 0x6b7   : > { %v859_v25 = vmul.f32 %v2003_v22, %v1660_v23  ;;  %v847_v26 = vpop.f32.mrb[5].mxu0 }
 0x6b8   : > { %v858_v27 = vmul.f32 %v2005_v24, %v847_v26 }
 0x6ba   : > { %v1967_v29 = vpack.i.bf16 %v859_v25, %v858_v27  ;;  %v1688_v30 = vpop.f32.mrb[6].mxu0 }
 0x6bb   : > { %v1259_v31 = vmul.f32 %v2007_v28, %v1688_v30  ;;  %v1247_v32 = vpop.f32.mrb[7].mxu0 }
 0x6bc   : > { %v1258_v33 = vmul.f32 %v2009_v21, %v1247_v32  ;;  %1968 = vrot.lane.b32.xlu0 %v1967_v29, %s2182_s7 }
 0x6be   : > { %v1977_v34 = vpack.i.bf16 %v1259_v31, %v1258_v33 }
 0x6c0   : > { %1978 = vrot.lane.b32.xlu1 %v1977_v34, %s2180_s21 }
 0x72e   : > { %v1969_v41 = vpop.permute.xlu0 %1968 }
 0x72f   : > { %v1971_v44 = vunpack.i.h.bf16 %v1969_v41  ;;  %v1970_v45 = vunpack.i.l.bf16 %v1969_v41 }
 0x731   : > { %v1284_v47 = vsel %vm466_vm0, %v656_v42, %v1970_v45  ;;  %v1285_v48 = vsel %vm466_vm0, %v657_v46, %v1971_v44 }
 0x732   : > { %v1979_v53 = vpop.permute.xlu1 %1978  ;;  %v1287_v56 = vsel %vm1286_vm3, %v1284_v47, %v1975_v52  ;;  %v1288_v57 = vsel %vm1286_vm3, %v1285_v48, %v1976_v49 }
 0x733   : > { %v1981_v54 = vunpack.i.h.bf16 %v1979_v53  ;;  %v1980_v55 = vunpack.i.l.bf16 %v1979_v53 }
 0x735   : > { %v1290_v51 = vsel %vm1289_vm4, %v1287_v56, %v1980_v55  ;;  %v1291_v58 = vsel %vm1289_vm4, %v1288_v57, %v1981_v54 }
 0x736   : > { %1721 = vmatprep.mubr.f32.mxu0 %v1290_v51 }
 0x737   : > { %1722 = vmatmul.mubr.f32.vlgmr.msra.gmra.mrb[8].mxu0 %v1291_v58 }
 0x80a   : > { %v1723_v59 = vpop.f32.mrb[8].mxu0 }
 0x80b   : > { %v1374_v60 = vadd.f32 %v1723_v59, %v1522_v50  ;;  %v1368_v43 = vpop.f32.mrb[9].mxu0 }
 0x80c   : > { %v1369_v61 = vadd.f32 %v1522_v50, %v1368_v43 }
 0x80d   : > { %1378 = vst [vmem:[%s244_s8 + $0x8] sm:$0xff] %v1374_v60 }
 0x80e   : > { %1377 = vst [vmem:[%s244_s8] sm:$0xff] %v1369_v61 }
 0x80f   : > { %2113 = shalt.err (!%p2110_p2)
}
 0x810   : > { %s2114_s25 = scalar_lea.hbm %s2537_s29, 256  ;;  %s2118_s7 = scalar_lea.hbm %s2585_s4, 512 }
 0x811   : > { %p2115_p13 = scmp.ne.s32.totalorder %s2537_s29, %s2114_s25  ;;  %p2119_p4 = scmp.lt.u32.totalorder %s2537_s29, %s2585_s4 }
 0x812   : > { %p2120_p7 = scmp.lt.u32.totalorder %s2118_s7, %s2114_s25  ;;  %p2122_p11 = scmp.lt.u32.totalorder %s2114_s25, %s2537_s29 }
 0x813   : > { %p2116_p6 = pnand %p2115_p13, %p2601_p0 }
 0x814   : > { %p2121_p8 = por %p2120_p7, %p2119_p4 }
 0x815   : > { %p2117_p10 = pneg %p2116_p6 }
 0x816   : > { %p2123_p1 = por %p2122_p11, %p2121_p8 }
 0x818   : > { %p2124_p3 = pnand %p2123_p1, %p2117_p10 }
 0x81a   : > { %2127 = shalt.err (!%p2124_p3)
}
 0x81b   : > { %s2184_s9 = smov 128   ;;  %s2185_s28 = smov 8  }
 0x81c   : > { %1870 = dma.vmem_to_hbm [thread:$0]  (%p2601_p0), %s2532_s30, 256, %s2537_s29, %s1380_s5, %s2184_s9, %s2184_s9, %s2185_s28  }
 0x81d PF: > { %s1408_s27 = sand.u32 1, %s2158_s15   ;;  %p2602_p5 = scmp.ne.s32.totalorder %s2590_s22, 0 }
 0x81e   : > { %p2603_p9 = scmp.ge.s32.totalorder %s2170_s18, 2  ;;  %s1409_s20 = scalar_lea.sflag [#allocation5], %s1408_s27 }
 0x820   : > { %p1884_p12 = pnand %p2603_p9, %p2602_p5 }
 0x822   : > { %2153 = dma.done.wait (!%p1884_p12), %s1409_s20, 256  }
 0x823   : > { %2155 = vsyncadd (!%p1884_p12), %s1409_s20, 4294967040  ;;  %p18_p2 = scmp.ge.s32.totalorder %s2324_s11, 4   ;;  %s2604_s15 = smov %s2162_s16 }
 0x824   : > { %s2605_s16 = smov %s2166_s17  ;;  %s2606_s17 = smov %s2333_s14 }
 0x825   : > { %s2607_s18 = smov %s2324_s11  ;;  %20 = sbr.rel (!%p18_p2) target bundleno = 6 (0x6), region = 89 }
 0x82c   :  { %1414 = vsyncpa [#allocation4], 1 }
 0x82d   :  { %1416 = vsyncpa [#allocation4 + $0x1], 1 }
 0x82e   :  { %1417 = vsyncpa [#allocation7], 1 }
 0x82f   :  { %1418 = vsyncpa [#allocation5], 1 }
 0x830   :  { %1420 = vsyncpa [#allocation5 + $0x1], 1 }

</bundles_post_ra>
